<compile_context>
chip_gen: v6e
topology: v6e:2x2x1
jax: 0.10.0
libtpu: 0.0.40
codegen_flags: <defaults>
</compile_context>

<pallas_src>
import functools

import jax
import jax.numpy as jnp
from jax.experimental import pallas as pl
from jax.experimental.pallas import tpu as pltpu


# ---------------------------------------------------------------------------
# Generation-aware VMEM budgets.
# ---------------------------------------------------------------------------
def _tpu_budgets():
    cap = 0
    try:
        info = pltpu.get_tpu_info()
        cap = int(getattr(info, "vmem_capacity_bytes", 0) or 0)
    except Exception:
        cap = 0
    if cap <= 0:
        cap = 64 * 1024 * 1024  # conservative (v7x-sized) fallback
    vmem_limit = int(cap * 3 // 4)      # ~96 MiB on v5e/v6e, ~48 MiB on v7x
    fused_budget = int(cap * 5 // 8)    # ~80 MiB on v5e/v6e, ~40 MiB on v7x
    tile_budget = int(cap // 16)        # per-tile (C, hwt) byte budget, tiled path
    return vmem_limit, fused_budget, tile_budget


# ---------------------------------------------------------------------------
# Fused single-pass kernel: whole (bt, C, HW) image block per grid step,
# vectorized over the batch tile (no Python unroll).
# ---------------------------------------------------------------------------
def _fused_kernel(x_ref, w1_ref, w2_ref, o_ref, *, inv_hw):
    # x_ref / o_ref: (bt, C, HW) in the input dtype (HW on lanes, C on sublanes)
    # w1_ref: (C_r, C)   first 1x1 conv weight
    # w2_ref: (C, C_r)   second 1x1 conv weight
    x = x_ref[...]                                       # (bt, C, HW), native dtype
    bt, c, hw = x.shape
    w1 = w1_ref[...].astype(jnp.float32)                 # (C_r, C)
    w2 = w2_ref[...].astype(jnp.float32)                 # (C, C_r)
    c_r = w1.shape[0]

    # Avg pool: sum over HW as an MXU matmul against ones (contract the lane axis)
    # with f32 accumulation — avoids a full-block f32 upcast for bf16 inputs.
    ones = jnp.ones((bt, 1, hw), x.dtype)
    s = jnp.einsum("bch,bkh->bck", x, ones,
                   preferred_element_type=jnp.float32)   # (bt, C, 1)
    avg = s * inv_hw                                     # (bt, C, 1) f32
    # Max pool: exact lane reduce in the native dtype.
    mx = jnp.max(x, axis=-1, keepdims=True).astype(jnp.float32)   # (bt, C, 1)

    # Stack avg / max as two lane columns -> one batched matmul pair for both
    # branches of the shared fc.
    col = jax.lax.broadcasted_iota(jnp.int32, (bt, c, 2), 2)
    pooled = jnp.where(col == 0, avg, mx)                # (bt, C, 2) f32

    w1b = jnp.broadcast_to(w1, (bt, c_r, c))             # tiny, hoisted (no loop)
    w2b = jnp.broadcast_to(w2, (bt, c, c_r))
    h = jnp.maximum(
        jnp.einsum("brc,bcn->brn", w1b, pooled,
                   preferred_element_type=jnp.float32), 0.0)      # (bt, C_r, 2)
    z = jnp.einsum("bcr,brn->bcn", w2b, h,
                   preferred_element_type=jnp.float32)            # (bt, C, 2)

    # y = sigmoid(fc(avg) + fc(max)): summing the two lane columns adds the branches.
    y = jax.nn.sigmoid(jnp.sum(z, axis=-1, keepdims=True)).astype(x.dtype)  # (bt, C, 1)
    o_ref[...] = x * y                                   # lane broadcast over HW


# ---------------------------------------------------------------------------
# Tiled pooling kernel (large H*W): accumulates sum/max over HW tiles in VMEM
# scratch and finalizes y = sigmoid(fc(avg) + fc(max)).  Ragged last tile is
# masked (zero fill for the sum, -inf fill for the max).
# ---------------------------------------------------------------------------
def _pool_kernel(x_ref, w1_ref, w2_ref, y_ref, sum_acc, max_acc,
                 *, inv_hw, hw_total, needs_mask):
    # x_ref: (1, C, hwt); y_ref: (1, C, 1) f32; scratch: (C, 1) f32 each
    j = pl.program_id(1)

    @pl.when(j == 0)
    def _init():
        sum_acc[...] = jnp.zeros(sum_acc.shape, jnp.float32)
        max_acc[...] = jnp.full(max_acc.shape, -jnp.inf, jnp.float32)

    x = x_ref[0]                                         # (C, hwt)
    hwt = x.shape[-1]
    if needs_mask:
        lane = jax.lax.broadcasted_iota(jnp.int32, (1, hwt), 1) + j * hwt
        valid = lane < hw_total
        xz = jnp.where(valid, x, jnp.zeros_like(x))
        xm = jnp.where(valid, x, jnp.full_like(x, -jnp.inf))
    else:
        xz = x
        xm = x

    # Sum over HW as an MXU matmul against a ones row (f32 accumulation,
    # no full-tile f32 upcast).
    ones_row = jnp.ones((1, hwt), x.dtype)
    sum_acc[...] += jnp.einsum("ch,kh->ck", xz, ones_row,
                               preferred_element_type=jnp.float32)      # (C, 1)
    max_acc[...] = jnp.maximum(
        max_acc[...], jnp.max(xm, axis=-1, keepdims=True).astype(jnp.float32))

    @pl.when(j == pl.num_programs(1) - 1)
    def _finalize():
        w1 = w1_ref[...].astype(jnp.float32)             # (C_r, C)
        w2 = w2_ref[...].astype(jnp.float32)             # (C, C_r)
        avg = sum_acc[...] * inv_hw                      # (C, 1)
        mx = max_acc[...]                                # (C, 1)
        col = jax.lax.broadcasted_iota(jnp.int32, (avg.shape[0], 2), 1)
        pooled = jnp.where(col == 0, avg, mx)            # (C, 2)
        h = jnp.maximum(jnp.dot(w1, pooled, preferred_element_type=jnp.float32), 0.0)
        z = jnp.dot(w2, h, preferred_element_type=jnp.float32)          # (C, 2)
        y_ref[0] = jax.nn.sigmoid(jnp.sum(z, axis=-1, keepdims=True))   # (C, 1) f32


# ---------------------------------------------------------------------------
# Public wrapper — same semantics as the PyTorch module's forward().
# ---------------------------------------------------------------------------
def channel_attention(x_nchw, w1, w2, *, force_tiled=False, max_hw_tile_bytes=None):
    """x_nchw: (B, C, H, W); w1: (C//r, C, 1, 1); w2: (C, C//r, 1, 1)."""
    B, C, H, W = x_nchw.shape
    HW = H * W
    C_r = w1.shape[0]
    itemsize = jnp.dtype(x_nchw.dtype).itemsize

    vmem_limit, fused_budget, tile_budget = _tpu_budgets()
    if max_hw_tile_bytes is None:
        max_hw_tile_bytes = tile_budget

    # Free reshapes only: NCHW stays NCHW (no transpose, no dtype change).
    x3 = x_nchw.reshape(B, C, HW)
    w1m = w1.reshape(C_r, C)
    w2m = w2.reshape(C, C_r)

    inv_hw = 1.0 / float(HW)
    blk1 = C * HW * itemsize                 # one single-batch (C, HW) block

    use_fused = (not force_tiled) and (4 * blk1 <= fused_budget)

    if use_fused:
        # Largest divisor of B whose double-buffered in+out blocks fit the budget,
        # capped at B//2 (B >= 2) so the 'parallel' grid has >= 2 steps and both
        # v7x TensorCores get fed.  Costs nothing on single-TC v5e/v6e.
        bt = 1
        limit = B if B == 1 else B // 2
        for cand in range(max(limit, 1), 0, -1):
            if B % cand == 0 and 4 * cand * blk1 <= fused_budget:
                bt = cand
                break
        kernel = functools.partial(_fused_kernel, inv_hw=inv_hw)
        out3 = pl.pallas_call(
            kernel,
            out_shape=jax.ShapeDtypeStruct((B, C, HW), x_nchw.dtype),
            grid_spec=pltpu.PrefetchScalarGridSpec(
                num_scalar_prefetch=0,
                grid=(B // bt,),
                in_specs=[
                    pl.BlockSpec((bt, C, HW), lambda i: (i, 0, 0)),
                    pl.BlockSpec((C_r, C), lambda i: (0, 0)),
                    pl.BlockSpec((C, C_r), lambda i: (0, 0)),
                ],
                out_specs=pl.BlockSpec((bt, C, HW), lambda i: (i, 0, 0)),
            ),
            compiler_params=pltpu.CompilerParams(
                dimension_semantics=("parallel",),
                vmem_limit_bytes=vmem_limit),
        )(x3, w1m, w2m)
        return out3.reshape(B, C, H, W)

    # ----- tiled path: bounded VMEM for large feature maps -----
    # Near-budget multiple-of-128 HW tile; pl.cdiv grid + in-kernel masking of
    # the ragged last tile (no dependence on HW having a convenient divisor).
    lanes_budget = max(128, (max_hw_tile_bytes // (C * itemsize)) // 128 * 128)
    hwt = HW if HW <= lanes_budget else lanes_budget
    n_j = pl.cdiv(HW, hwt)
    needs_mask = (HW % hwt) != 0

    pool = functools.partial(_pool_kernel, inv_hw=inv_hw,
                             hw_total=HW, needs_mask=needs_mask)
    y = pl.pallas_call(
        pool,
        out_shape=jax.ShapeDtypeStruct((B, C, 1), jnp.float32),
        grid_spec=pltpu.PrefetchScalarGridSpec(
            num_scalar_prefetch=0,
            grid=(B, n_j),
            in_specs=[
                pl.BlockSpec((1, C, hwt), lambda b, j: (b, 0, j)),
                pl.BlockSpec((C_r, C), lambda b, j: (0, 0)),
                pl.BlockSpec((C, C_r), lambda b, j: (0, 0)),
            ],
            out_specs=pl.BlockSpec((1, C, 1), lambda b, j: (b, 0, 0)),
            scratch_shapes=[pltpu.VMEM((C, 1), jnp.float32),
                            pltpu.VMEM((C, 1), jnp.float32)],
        ),
        compiler_params=pltpu.CompilerParams(
            dimension_semantics=("parallel", "arbitrary"),
            vmem_limit_bytes=vmem_limit),
    )(x3, w1m, w2m)

    # Apply pass: pure streaming broadcast multiply — XLA runs this at the HBM
    # roofline and can fuse it with neighbors (review-endorsed simplification).
    out3 = x3 * y.astype(x3.dtype)
    return out3.reshape(B, C, H, W)


def _reference(x, w1, w2):
    """Pure-JAX reference matching the PyTorch module."""
    B, C, H, W = x.shape
    C_r = w1.shape[0]
    w1m = w1.reshape(C_r, C)
    w2m = w2.reshape(C, C_r)
    avg = jnp.mean(x, axis=(2, 3))                      # (B, C)
    mx = jnp.max(x, axis=(2, 3))                        # (B, C)

    def fc(v):
        return jnp.maximum(v @ w1m.T, 0.0) @ w2m.T

    y = jax.nn.sigmoid(fc(avg) + fc(mx))                # (B, C)
    return x * y[:, :, None, None]


if __name__ == "__main__":
    key = jax.random.PRNGKey(0)
    k_x, k_x2, k_w1, k_w2 = jax.random.split(key, 4)

    B, C, r = 2, 32, 16
    C_r = C // r
    H = W = 16

    x = jax.random.normal(k_x, (B, C, H, W), dtype=jnp.float32)
    # Deterministic synthetic weights (shapes from the Conv2d layers in __init__).
    w1 = jax.random.normal(k_w1, (C_r, C, 1, 1), dtype=jnp.float32) * 0.1
    w2 = jax.random.normal(k_w2, (C, C_r, 1, 1), dtype=jnp.float32) * 0.1

    ref = _reference(x, w1, w2)

    # Fused single-pass path (what small/medium feature maps use).
    out = jax.block_until_ready(channel_attention(x, w1, w2))
    assert out.shape == (B, C, H, W)
    assert jnp.allclose(out, ref, atol=1e-4, rtol=1e-4)

    # VMEM-bounded tiled path: 2 full 128-wide HW tiles of the 256-wide spatial axis.
    out_t = jax.block_until_ready(
        channel_attention(x, w1, w2, force_tiled=True,
                          max_hw_tile_bytes=C * 128 * 4))
    assert jnp.allclose(out_t, ref, atol=1e-4, rtol=1e-4)

    # Tiled path with a ragged (masked) last tile: HW = 192 -> tiles of 128 + 64.
    x2 = jax.random.normal(k_x2, (B, C, 16, 12), dtype=jnp.float32)
    ref2 = _reference(x2, w1, w2)
    out_t2 = jax.block_until_ready(
        channel_attention(x2, w1, w2, force_tiled=True,
                          max_hw_tile_bytes=C * 128 * 4))
    assert jnp.allclose(out_t2, ref2, atol=1e-4, rtol=1e-4)

    print("KERNEL_OK")
</pallas_src>

<mosaic_0001>
module attributes {stable_mosaic.version = 11 : i64} {
  func.func @_fused_kernel(%arg0: i32, %arg1: memref<1x32x256xf32, #tpu.memory_space<vmem>>, %arg2: memref<2x32xf32, #tpu.memory_space<vmem>>, %arg3: memref<32x2xf32, #tpu.memory_space<vmem>>, %arg4: memref<1x32x256xf32, #tpu.memory_space<vmem>>) attributes {dimension_semantics = [#tpu.dimension_semantics<parallel>], iteration_bounds = array<i64: 2>, scalar_prefetch = 0 : i64, scratch_operands = 0 : i64, tpu.core_type = #tpu.core_type<tc>, window_params = [{transform_indices = @transform_0, window_bounds = array<i64: 1, 32, 256>}, {pipeline_mode = #tpu.pipeline_mode<synchronous>, transform_indices = @transform_1, window_bounds = array<i64: 2, 32>}, {pipeline_mode = #tpu.pipeline_mode<synchronous>, transform_indices = @transform_2, window_bounds = array<i64: 32, 2>}, {transform_indices = @transform_3, window_bounds = array<i64: 1, 32, 256>}]} {
    %c0 = arith.constant 0 : index
    %c0_0 = arith.constant 0 : index
    %c0_1 = arith.constant 0 : index
    %0 = vector.load %arg1[%c0, %c0_0, %c0_1] : memref<1x32x256xf32, #tpu.memory_space<vmem>>, vector<1x32x256xf32>
    %c0_2 = arith.constant 0 : index
    %c0_3 = arith.constant 0 : index
    %1 = vector.load %arg2[%c0_2, %c0_3] : memref<2x32xf32, #tpu.memory_space<vmem>>, vector<2x32xf32>
    %c0_4 = arith.constant 0 : index
    %c0_5 = arith.constant 0 : index
    %2 = vector.load %arg3[%c0_4, %c0_5] : memref<32x2xf32, #tpu.memory_space<vmem>>, vector<32x2xf32>
    %cst = arith.constant 1.000000e+00 : f32
    %3 = vector.broadcast %cst : f32 to vector<1x1x256xf32>
    "tpu.trace_start"() <{level = 10 : i32, message = "bch,bkh->bck"}> : () -> ()
    %cst_6 = arith.constant dense<0.000000e+00> : vector<1x32x1xf32>
    %4 = tpu.matmul %0, %3, %cst_6 {dimension_numbers = #tpu.dot_dimension_numbers<[2], [2], [1], [1], [0, 0, 0, 1, 1, 1], [0], [0]>} : vector<1x32x256xf32>, vector<1x1x256xf32>, vector<1x32x1xf32> -> vector<1x32x1xf32>
    "tpu.trace_stop"() : () -> ()
    %cst_7 = arith.constant 3.906250e-03 : f32
    %5 = vector.broadcast %cst_7 : f32 to vector<1x32x1xf32>
    %6 = arith.mulf %4, %5 : vector<1x32x1xf32>
    %cst_8 = arith.constant dense<0xFF800000> : vector<1x32xf32>
    %7 = vector.multi_reduction <maximumf>, %0, %cst_8 [2] : vector<1x32x256xf32> to vector<1x32xf32>
    %8 = vector.shape_cast %7 : vector<1x32xf32> to vector<1x32x1xf32>
    %9 = tpu.iota {dimensions = array<i32: 2>} : vector<1x32x2xi32>
    %c0_i32 = arith.constant 0 : i32
    %10 = vector.broadcast %c0_i32 : i32 to vector<1x32x2xi32>
    %11 = arith.cmpi eq, %9, %10 : vector<1x32x2xi32>
    %12 = vector.shape_cast %6 : vector<1x32x1xf32> to vector<1x32x1xf32>
    %13 = vector.broadcast %12 : vector<1x32x1xf32> to vector<1x32x2xf32>
    %14 = vector.shape_cast %8 : vector<1x32x1xf32> to vector<1x32x1xf32>
    %15 = vector.broadcast %14 : vector<1x32x1xf32> to vector<1x32x2xf32>
    %16 = arith.select %11, %13, %15 : vector<1x32x2xi1>, vector<1x32x2xf32>
    %17 = vector.shape_cast %1 : vector<2x32xf32> to vector<1x2x32xf32>
    %18 = vector.shape_cast %2 : vector<32x2xf32> to vector<1x32x2xf32>
    "tpu.trace_start"() <{level = 10 : i32, message = "brc,bcn->brn"}> : () -> ()
    %cst_9 = arith.constant dense<0.000000e+00> : vector<1x2x2xf32>
    %19 = tpu.matmul %17, %16, %cst_9 {dimension_numbers = #tpu.dot_dimension_numbers<[2], [1], [1], [2], [0, 0, 0, 1, 1, 2], [0], [0]>} : vector<1x2x32xf32>, vector<1x32x2xf32>, vector<1x2x2xf32> -> vector<1x2x2xf32>
    "tpu.trace_stop"() : () -> ()
    %cst_10 = arith.constant 0.000000e+00 : f32
    %20 = vector.broadcast %cst_10 : f32 to vector<1x2x2xf32>
    %21 = arith.maximumf %19, %20 : vector<1x2x2xf32>
    "tpu.trace_start"() <{level = 10 : i32, message = "bcr,brn->bcn"}> : () -> ()
    %cst_11 = arith.constant dense<0.000000e+00> : vector<1x32x2xf32>
    %22 = tpu.matmul %18, %21, %cst_11 {dimension_numbers = #tpu.dot_dimension_numbers<[2], [1], [1], [2], [0, 0, 0, 1, 1, 2], [0], [0]>} : vector<1x32x2xf32>, vector<1x2x2xf32>, vector<1x32x2xf32> -> vector<1x32x2xf32>
    "tpu.trace_stop"() : () -> ()
    %cst_12 = arith.constant dense<0.000000e+00> : vector<1x32xf32>
    %23 = vector.multi_reduction <add>, %22, %cst_12 [2] : vector<1x32x2xf32> to vector<1x32xf32>
    %24 = vector.shape_cast %23 : vector<1x32xf32> to vector<1x32x1xf32>
    %25 = arith.negf %24 : vector<1x32x1xf32>
    %26 = math.exp %25 : vector<1x32x1xf32>
    %cst_13 = arith.constant 1.000000e+00 : f32
    %27 = vector.broadcast %cst_13 : f32 to vector<1x32x1xf32>
    %28 = arith.addf %27, %26 : vector<1x32x1xf32>
    %29 = arith.divf %27, %28 : vector<1x32x1xf32>
    %30 = vector.broadcast %29 : vector<1x32x1xf32> to vector<1x32x256xf32>
    %31 = arith.mulf %0, %30 : vector<1x32x256xf32>
    %c0_14 = arith.constant 0 : index
    %c0_15 = arith.constant 0 : index
    %c0_16 = arith.constant 0 : index
    %32 = vector.load %arg4[%c0_14, %c0_15, %c0_16] : memref<1x32x256xf32, #tpu.memory_space<vmem>>, vector<1x32x256xf32>
    tpu.vector_store %arg4[%c0_14, %c0_15, %c0_16], %31 {strides = array<i32>} : memref<1x32x256xf32, #tpu.memory_space<vmem>>, vector<1x32x256xf32>,
    return
  }
  func.func @transform_0(%arg0: i32) -> (i32, i32, i32) {
    %c0_i32 = arith.constant 0 : i32
    %c0_i32_0 = arith.constant 0 : i32
    %c0_i32_1 = arith.constant 0 : i32
    return %arg0, %c0_i32, %c0_i32_0 : i32, i32, i32
  }
  func.func @transform_1(%arg0: i32) -> (i32, i32) {
    %c0_i32 = arith.constant 0 : i32
    %c0_i32_0 = arith.constant 0 : i32
    %c0_i32_1 = arith.constant 0 : i32
    return %c0_i32, %c0_i32_0 : i32, i32
  }
  func.func @transform_2(%arg0: i32) -> (i32, i32) {
    %c0_i32 = arith.constant 0 : i32
    %c0_i32_0 = arith.constant 0 : i32
    %c0_i32_1 = arith.constant 0 : i32
    return %c0_i32, %c0_i32_0 : i32, i32
  }
  func.func @transform_3(%arg0: i32) -> (i32, i32, i32) {
    %c0_i32 = arith.constant 0 : i32
    %c0_i32_0 = arith.constant 0 : i32
    %c0_i32_1 = arith.constant 0 : i32
    return %arg0, %c0_i32, %c0_i32_0 : i32, i32, i32
  }
}

</mosaic_0001>

<bundles_post_ra>
// kernel: tpu_custom_call.1
= control target key start
LH: loop header
LB: loop body
LE: loop exit
PB: predicated region body
PF: predicated region fallthrough
CT: control target
= control target key end

     0   :  { %8 = vsyncpa [#allocation3], 0  ;;  %s1023_s0 = inlined_call_operand.hbm [shape: f32[2,32,256], index: 0, kind: input, shape index: {}]   ;;  %s1024_s1 = inlined_call_operand.vmem [shape: f32[2,32], index: 1, kind: input, shape index: {}]   ;;  %s1025_s2 = inlined_call_operand.vmem [shape: f32[32,2], index: 2, kind: input, shape index: {}]   ;;  %s1026_s3 = inlined_call_operand.hbm [shape: f32[2,32,256], index: 3, kind: output, shape index: {}]  }
   0x1   :  { %10 = vsyncpa [#allocation3 + $0x1], 0 }
   0x2   :  { %11 = vsyncpa [#allocation4], 0 }
   0x3   :  { %13 = vsyncpa [#allocation4 + $0x1], 0  ;;  %s798_s12 = smov 0   ;;  %s800_s13 = smov 0  }
   0x4   :  { %s802_s14 = smov 0   ;;  %s804_s15 = smov 0  }
   0x5 LB: > { %s819_s16 = sadd.s32 4294967295, %s768_s15   ;;  %s553_s17 = sadd.s32 4294967294, %s768_s15   ;;  %s768_s15 = sphi %s804_s15, %s1041_s15   ;;  %s764_s14 = sphi %s802_s14, %s1040_s14   ;;  %s760_s13 = sphi %s800_s13, %s1039_s13   ;;  %s756_s12 = sphi %s798_s12, %s1038_s12  }
   0x6   : > { %s823_s18 = sadd.s32 1, %s768_s15   ;;  %s26_s19 = sadd.s32 1, %s764_s14 }
   0x7   : > { %s23_s20 = ssub.s32 %s768_s15, %s823_s18  ;;  %p33_p0 = scmp.ne.s32.totalorder %s764_s14, %s760_s13 }
   0x8   : > { %p24_p1 = scmp.eq.s32.totalorder %s23_s20, 0  ;;  %p34_p2 = scmp.eq.s32.totalorder %s768_s15, 0 }
   0x9   : > { %p39_p3 = scmp.ne.s32.totalorder %s760_s13, %s756_s12  ;;  %p40_p4 = scmp.eq.s32.totalorder %s819_s16, 0 }
   0xa   : > { %s835_s21 = scalar_select %p24_p1, %s764_s14, %s26_s19  }
   0xb   : > { %p837_p5 = por %p34_p2, %p33_p0  ;;  %p841_p6 = por %p40_p4, %p39_p3 }
   0xc   : > { %p105_p7 = scmp.eq.s32.totalorder %s819_s16, 1  ;;  %p111_p8 = scmp.eq.s32.totalorder %s553_s17, 1 }
   0xd   : > { %s1030_s23 = scalar_select %p841_p6, 1, 0 }
   0xe   : > { %p620_p10 = scmp.lt.s32.totalorder %s768_s15, 2  ;;  %p848_p11 = por %p105_p7, %p33_p0 }
   0xf   : > { %p852_p12 = por %p111_p8, %p39_p3  ;;  %s137_s26 = sand.u32 1, %s764_s14  }
  0x10   : > { %s1031_s24 = scalar_select %p848_p11, 1, 0 }
  0x11   : > { %s1032_s25 = scalar_select %p852_p12, 1, 0 }
  0x12   : > { %s577_s27 = sshll.u32 %s768_s15, 10  ;;  %s556_s28 = sshll.u32 %s137_s26, 6 }
  0x13   : > { %s861_s4 = scalar_lea.hbm %s1023_s0, %s577_s27  ;;  %s141_s5 = scalar_lea.vmem [#allocation2], %s556_s28 }
  0x14   : > { %s148_s6 = sshll.u32 %s141_s5, 4  ;;  %p865_p13 = pnand %p620_p10, %p837_p5  ;;  %s869_s6 = int_to_ptr.vmem [resolvable:$true] %s148_s6 }
  0x15   : > { %s871_s8 = scalar_lea.sflag [#allocation3], %s137_s26  ;;  %s676_s9 = scalar_lea.hbm %s861_s4, 1024 }
  0x16   : > { %p677_p0 = scmp.ne.s32.totalorder %s861_s4, %s676_s9  ;;  %p678_p1 = pneg %p865_p13 }
  0x17   : > { %s681_s17 = scalar_lea.hbm %s1023_s0, 2048  ;;  %p682_p4 = scmp.lt.s32.totalorder %s861_s4, %s1023_s0 }
  0x18   : > { %p679_p2 = pnand %p678_p1, %p677_p0  ;;  %p683_p5 = scmp.lt.s32.totalorder %s681_s17, %s676_s9 }
  0x1a   : > { %p680_p3 = pneg %p679_p2  ;;  %p684_p7 = por %p683_p5, %p682_p4 }
  0x1c   : > { %p685_p8 = pnand %p684_p7, %p680_p3 }
  0x1e   : > { %688 = shalt.err (!%p685_p8)
}
  0x1f   : > { %s689_s22 = scalar_lea.vmem %s869_s6, 1024  ;;  %s770_s26 = smov [#allocation2]  }
  0x20   : > { %p690_p10 = scmp.ne.s32.totalorder %s869_s6, %s689_s22  ;;  %s694_s27 = sshll.u32 %s770_s26, 4  ;;  %s695_s27 = int_to_ptr.vmem [resolvable:$false] %s694_s27 }
  0x21   : > { %s696_s28 = scalar_lea.vmem %s695_s27, 2048  ;;  %p697_p2 = scmp.lt.s32.totalorder %s869_s6, %s695_s27 }
  0x22   : > { %p692_p9 = pnand %p690_p10, %p678_p1  ;;  %p698_p12 = scmp.lt.s32.totalorder %s696_s28, %s689_s22 }
  0x24   : > { %p693_p0 = pneg %p692_p9  ;;  %p699_p11 = por %p698_p12, %p697_p2 }
  0x26   : > { %p700_p6 = pnand %p699_p11, %p693_p0 }
  0x28   : > { %703 = shalt.err (!%p700_p6)
}
  0x29   : > { %s771_s29 = smov 256   ;;  %s772_s30 = smov 16  }
  0x2a   : > { %615 = dma.hbm_to_vmem [thread:$0]  (!%p865_p13), %s861_s4, 1024, %s869_s6, %s871_s8, %s771_s29, %s771_s29, %s772_s30  }
  0x2b   : > { %p559_p9 = scmp.ge.s32.totalorder %s768_s15, 1  ;;  %p156_p1 = scmp.lt.s32.totalorder %s768_s15, 3 }
  0x2d   : > { %p157_p3 = pnand %p559_p9, %p156_p1 }
  0x2e   : > { %s895_s5 = sand.u32 (!%p157_p3), 1, %s760_s13   ;;  %p1034_p6 = scmp.ne.s32.totalorder (!%p157_p3), %s1030_s23, 0 }
  0x2f   : > { %160 = sbr.rel (%p157_p3) target bundleno = 793 (0x319), region = 32  ;;  %s560_s9 = sshll.u32 (!%p157_p3), %s895_s5, 6 }
  0x30   : > { %s163_s10 = scalar_lea.sflag (!%p157_p3), [#allocation3], %s895_s5  ;;  %s166_s11 = scalar_lea.vmem (!%p157_p3), [#allocation2], %s560_s9 }
  0x34   : > { %747 = dma.done.wait (%p1034_p6), %s163_s10, 1024  }
  0x35   : > { %749 = vsyncadd (%p1034_p6), %s163_s10, 4294966272  ;;  %v905_v0 = vld [vmem:[%s166_s11 + $0x30] sm:$0xff]  ;;  %v907_v1 = vld [vmem:[%s166_s11 + $0x38] sm:$0xff]  ;;  %v773_v16 = vmov 0.0   ;;  %vm774_vm0 = vmmov 0   ;;  %v230_v17 = vlaneseq  ;;  %vm237_vm2 = vcmask 261120  }
  0x36   : > { %v909_v2 = vld [vmem:[%s166_s11 + $0x20] sm:$0xff]  ;;  %v227_v3 = vmax.f32 %v905_v0, %v907_v1  ;;  %v211_v4 = vadd.f32 %v907_v1, %v905_v0  ;;  %v915_v5 = vld [vmem:[%s166_s11 + $0x28] sm:$0xff]  ;;  %v917_v6 = vld [vmem:[%s166_s11 + $0x10] sm:$0xff]  ;;  %589 = vmatprep.subr.mxu0 %v773_v16  ;;  %597 = vmatprep.mubr.msk.f32.mxu0 %vm774_vm0, %v773_v16  ;;  %vm312_vm3 = vcmask 15360   ;;  %vm325_vm4 = vcmask 1041408   ;;  %s188_s27 = scalar_lea.vmem [#allocation5], %s560_s9 }
  0x37   : > { %v919_v7 = vld [vmem:[%s166_s11 + $0x18] sm:$0xff]  ;;  %v208_v8 = vadd.f32 %v915_v5, %v909_v2  ;;  %v925_v10 = vld [vmem:[%s166_s11] sm:$0xff]  ;;  %v927_v11 = vld [vmem:[%s166_s11 + $0x8] sm:$0xff]  ;;  %v224_v12 = vmax.f32 %v909_v2, %v915_v5  ;;  %v231_v18 = vand.u32 127, %v230_v17  ;;  %s578_s28 = sshll.u32 %s819_s16, 10  ;;  %s480_s29 = sshll.u32 %s188_s27, 4  ;;  %s978_s29 = int_to_ptr.vmem [resolvable:$true] %s480_s29 }
  0x38   : > { %228 = vmax.xlane.f32.xlu1 %v227_v3  ;;  %212 = vadd.xlane.f32.xlu0 %v211_v4  ;;  %v205_v9 = vadd.f32 %v919_v7, %v917_v6  ;;  %v202_v13 = vadd.f32 %v927_v11, %v925_v10  ;;  %v221_v14 = vmax.f32 %v917_v6, %v919_v7  ;;  %v197_v34 = vld [vmem:[%s1024_s1] sm:$0x3]  ;;  %v199_v40 = vld [vmem:[%s1025_s2 + $0x8] sm:$0xff]  ;;  %v200_v41 = vld [vmem:[%s1025_s2 + $0x10] sm:$0xff]  ;;  %s976_s10 = scalar_lea.hbm %s1026_s3, %s578_s28  ;;  %s467_s16 = scalar_lea.sflag [#allocation4], %s895_s5 }
  0x39   : > { %v218_v15 = vmax.f32 %v925_v10, %v927_v11  ;;  %vm232_vm1 = vcmp.eq.s32.totalorder %v231_v18, 0  ;;  %v198_v36 = vld [vmem:[%s1025_s2] sm:$0xff]  ;;  %v201_v42 = vld [vmem:[%s1025_s2 + $0x18] sm:$0xff]  ;;  %s704_s11 = scalar_lea.vmem %s978_s29, 1024  ;;  %p1035_p12 = scmp.ne.s32.totalorder %s1031_s24, 0 }
  0x3a   : > { %602 = vmatprep.mubr.msk.f32.mxu1 %vm312_vm3, %v198_v36  ;;  %p705_p11 = scmp.ne.s32.totalorder %s978_s29, %s704_s11  ;;  %s775_s23 = smov [#allocation5]  }
  0x3b   : > { %s708_s4 = sshll.u32 %s775_s23, 4  ;;  %s709_s4 = int_to_ptr.vmem [resolvable:$false] %s708_s4 }
  0x3c   : > { %209 = vadd.xlane.f32.xlu0 %v208_v8  ;;  %206 = vadd.xlane.f32.xlu1 %v205_v9  ;;  %p706_p13 = pnand %p705_p11, %p1035_p12  ;;  %s710_s6 = scalar_lea.vmem %s709_s4, 2048 }
  0x3d   : > { %p711_p5 = scmp.lt.s32.totalorder %s978_s29, %s709_s4  ;;  %p712_p7 = scmp.lt.s32.totalorder %s710_s6, %s704_s11 }
  0x3e   : > { %p707_p4 = pneg %p706_p13 }
  0x3f   : > { %p713_p8 = por %p712_p7, %p711_p5 }
  0x40   : > { %225 = vmax.xlane.f32.xlu0 %v224_v12  ;;  %203 = vadd.xlane.f32.xlu1 %v202_v13 }
  0x41   : > { %p714_p10 = pnand %p713_p8, %p707_p4 }
  0x44   : > { %222 = vmax.xlane.f32.xlu0 %v221_v14  ;;  %219 = vmax.xlane.f32.xlu1 %v218_v15 }
  0xc1   : > { %v229_v19 = vpop.xlane.xlu1 %228  ;;  %v213_v20 = vpop.xlane.xlu0 %212 }
  0xc2   : > { %v217_v21 = vmul.f32 0.00390625, %v213_v20 }
  0xc4   : > { %v236_v22 = vsel %vm232_vm1, %v217_v21, %v229_v19 }
  0xc5   : > { %590 = vmatpush3.msra.mxu0 %v236_v22  ;;  %v210_v23 = vpop.xlane.xlu0 %209  ;;  %v207_v24 = vpop.xlane.xlu1 %206 }
  0xc6   : > { %591 = vmatprep.subr.mxu0 %v773_v16  ;;  %v216_v25 = vmul.f32 0.00390625, %v210_v23  ;;  %v215_v29 = vmul.f32 0.00390625, %v207_v24 }
  0xc9   : > { %v226_v26 = vpop.xlane.xlu0 %225  ;;  %v204_v27 = vpop.xlane.xlu1 %203 }
  0xca   : > { %v235_v28 = vsel %vm232_vm1, %v216_v25, %v226_v26  ;;  %v214_v30 = vmul.f32 0.00390625, %v204_v27 }
  0xcb   : > { %592 = vmatpush3.msra.mxu0 %v235_v28 }
  0xcc   : > { %593 = vmatprep.subr.mxu0 %v773_v16 }
  0xcd   : > { %v223_v31 = vpop.xlane.xlu0 %222  ;;  %v220_v32 = vpop.xlane.xlu1 %219 }
  0xce   : > { %v234_v33 = vsel %vm232_vm1, %v215_v29, %v223_v31  ;;  %v233_v35 = vsel %vm232_vm1, %v214_v30, %v220_v32 }
  0xcf   : > { %594 = vmatpush3.msra.mxu0 %v234_v33 }
  0xd0   : > { %595 = vmatprep.subr.mxu0 %v773_v16 }
  0xd1   : > { %596 = vmatpush3.msra.mxu0 %v233_v35 }
  0xd2   : > { %598 = vmatmul.mubr.msk.f32.vlgmr.msra.gmra.mxu0 %vm237_vm2, %v197_v34 }
 0x192   : > { %v307_v37 = vpop.f32.mrf.mxu0 }
 0x193   : > { %v311_v38 = vmax.f32 %v307_v37, 0.0 }
 0x194   : > { %v599_v39 = vpop.f32.mrf.mxu0 }
 0x195   : > { %600 = vmatprep.subr.msk.mxu1 %vm325_vm4, %v311_v38 }
 0x196   : > { %601 = vmatpush3.msk.msra.mxu1 %vm325_vm4, %v311_v38 }
 0x197   : > { %603 = vmatmul.mubr.msk.f32.vlgmr.msra.gmra.mxu1 %vm312_vm3, %v199_v40 }
 0x198   : > { %605 = vmatprep.mubr.msk.f32.mxu1 %vm312_vm3, %v200_v41 }
 0x19b   : > { %606 = vmatmul.mubr.msk.f32.gmra.mxu1 %vm312_vm3, %v201_v42 }
 0x257   : > { %v604_v43 = vpop.f32.mrf.mxu1 }
 0x258   : > { %v417_v44 = vsel %vm312_vm3, %v604_v43, 0.0 }
 0x259   : > { %418 = vadd.xlane.f32.xlu1 %v417_v44  ;;  %v395_v45 = vpop.f32.mrf.mxu1 }
 0x25a   : > { %v414_v46 = vsel %vm312_vm3, %v395_v45, 0.0 }
 0x25b   : > { %415 = vadd.xlane.f32.xlu0 %v414_v46  ;;  %v607_v47 = vpop.f32.mrf.mxu1 }
 0x25c   : > { %v423_v48 = vsel %vm312_vm3, %v607_v47, 0.0 }
 0x25d   : > { %424 = vadd.xlane.f32.xlu1 %v423_v48  ;;  %v405_v49 = vpop.f32.mrf.mxu1 }
 0x25e   : > { %v420_v50 = vsel %vm312_vm3, %v405_v49, 0.0 }
 0x25f   : > { %421 = vadd.xlane.f32.xlu0 %v420_v50 }
 0x2e2   : > { %v419_v51 = vpop.xlane.xlu1 %418 }
 0x2e3   : > { %v569_v52 = vmul.f32 -1.442695, %v419_v51 }
 0x2e4   : > { %v416_v53 = vpop.xlane.xlu0 %415 }
 0x2e5   : > { %660 = vpow2.f32 %v569_v52  ;;  %v568_v54 = vmul.f32 -1.442695, %v416_v53 }
 0x2e6   : > { %v425_v55 = vpop.xlane.xlu1 %424 }
 0x2e7   : > { %662 = vpow2.f32 %v568_v54  ;;  %v571_v56 = vmul.f32 -1.442695, %v425_v55 }
 0x2e8   : > { %v422_v57 = vpop.xlane.xlu0 %421 }
 0x2e9   : > { %664 = vpow2.f32 %v571_v56  ;;  %v570_v58 = vmul.f32 -1.442695, %v422_v57 }
 0x2eb   : > { %666 = vpow2.f32 %v570_v58 }
 0x2f2   : > { %v661_v59 = vpop.eup %660 }
 0x2f3   : > { %v439_v60 = vadd.f32 1.0, %v661_v59 }
 0x2f4   : > { %v663_v61 = vpop.eup %662 }
 0x2f5   : > { %668 = vrcp.f32 %v439_v60  ;;  %v438_v62 = vadd.f32 1.0, %v663_v61 }
 0x2f6   : > { %v665_v63 = vpop.eup %664 }
 0x2f7   : > { %670 = vrcp.f32 %v438_v62  ;;  %v441_v3 = vadd.f32 1.0, %v665_v63 }
 0x2f8   : > { %v667_v4 = vpop.eup %666 }
 0x2f9   : > { %672 = vrcp.f32 %v441_v3  ;;  %v440_v8 = vadd.f32 1.0, %v667_v4 }
 0x2fb   : > { %674 = vrcp.f32 %v440_v8 }
 0x302   : > { %v669_v9 = vpop.eup %668 }
 0x303   : > { %v452_v12 = vmul.f32 %v669_v9, %v917_v6  ;;  %v453_v13 = vmul.f32 %v669_v9, %v919_v7 }
 0x304   : > { %v671_v14 = vpop.eup %670 }
 0x305   : > { %460 = vst [vmem:[%s188_s27 + $0x10] sm:$0xff] %v452_v12  ;;  %461 = vst [vmem:[%s188_s27 + $0x18] sm:$0xff] %v453_v13  ;;  %v450_v15 = vmul.f32 %v671_v14, %v925_v10  ;;  %v451_v16 = vmul.f32 %v671_v14, %v927_v11 }
 0x306   : > { %v673_v17 = vpop.eup %672 }
 0x307   : > { %458 = vst [vmem:[%s188_s27] sm:$0xff] %v450_v15  ;;  %459 = vst [vmem:[%s188_s27 + $0x8] sm:$0xff] %v451_v16  ;;  %v456_v6 = vmul.f32 %v673_v17, %v905_v0  ;;  %v457_v7 = vmul.f32 %v673_v17, %v907_v1 }
 0x308   : > { %v675_v18 = vpop.eup %674 }
 0x309   : > { %464 = vst [vmem:[%s188_s27 + $0x30] sm:$0xff] %v456_v6  ;;  %465 = vst [vmem:[%s188_s27 + $0x38] sm:$0xff] %v457_v7  ;;  %v454_v10 = vmul.f32 %v675_v18, %v909_v2  ;;  %v455_v11 = vmul.f32 %v675_v18, %v915_v5 }
 0x30b   : > { %462 = vst [vmem:[%s188_s27 + $0x20] sm:$0xff] %v454_v10  ;;  %463 = vst [vmem:[%s188_s27 + $0x28] sm:$0xff] %v455_v11 }
 0x30c   : > { %717 = shalt.err (!%p714_p10)
}
 0x30d   : > { %s718_s7 = scalar_lea.hbm %s976_s10, 1024  ;;  %s722_s19 = scalar_lea.hbm %s1026_s3, 2048 }
 0x30e   : > { %p719_p0 = scmp.ne.s32.totalorder %s976_s10, %s718_s7  ;;  %p723_p1 = scmp.lt.s32.totalorder %s976_s10, %s1026_s3 }
 0x30f   : > { %p724_p3 = scmp.lt.s32.totalorder %s722_s19, %s718_s7 }
 0x310   : > { %p720_p2 = pnand %p719_p0, %p1035_p12 }
 0x311   : > { %p725_p6 = por %p724_p3, %p723_p1 }
 0x312   : > { %p721_p9 = pneg %p720_p2 }
 0x314   : > { %p726_p11 = pnand %p725_p6, %p721_p9 }
 0x316   : > { %729 = shalt.err (!%p726_p11)
}
 0x317   : > { %s776_s26 = smov 256   ;;  %s777_s27 = smov 16  }
 0x318   : > { %610 = dma.vmem_to_hbm [thread:$0]  (%p1035_p12), %s978_s29, 1024, %s976_s10, %s467_s16, %s776_s26, %s776_s26, %s777_s27  }
 0x319 PF: > { %s495_s28 = sand.u32 1, %s756_s12   ;;  %p1036_p13 = scmp.ne.s32.totalorder %s1032_s25, 0 }
 0x31a   : > { %p1037_p4 = scmp.ge.s32.totalorder %s768_s15, 2  ;;  %s496_s30 = scalar_lea.sflag [#allocation4], %s495_s28 }
 0x31c   : > { %p617_p5 = pnand %p1037_p4, %p1036_p13 }
 0x31e   : > { %p618_p7 = pneg %p617_p5 }
 0x320   : > { %751 = dma.done.wait (%p618_p7), %s496_s30, 1024  }
 0x321   : > { %753 = vsyncadd (%p618_p7), %s496_s30, 4294966272  ;;  %p16_p8 = scmp.ge.s32.totalorder %s823_s18, 4   ;;  %s1038_s12 = smov %s760_s13 }
 0x322   : > { %s1039_s13 = smov %s764_s14  ;;  %s1040_s14 = smov %s835_s21 }
 0x323   : > { %s1041_s15 = smov %s823_s18  ;;  %18 = sbr.rel (!%p16_p8) target bundleno = 5 (0x5), region = 77 }
 0x328   :  { %501 = vsyncpa [#allocation3], 1 }
 0x329   :  { %503 = vsyncpa [#allocation3 + $0x1], 1 }
 0x32a   :  { %504 = vsyncpa [#allocation4], 1 }
 0x32b   :  { %506 = vsyncpa [#allocation4 + $0x1], 1 }

</bundles_post_ra>
